<compile_context>
chip_gen: v7x
topology: tpu7x:2x2x1
jax: 0.10.0
libtpu: 0.0.40
codegen_flags: <defaults>
</compile_context>

<pallas_src>
import jax
import jax.numpy as jnp
from jax import lax
from jax.experimental import pallas as pl
from jax.experimental.pallas import tpu as pltpu


def gcn_kernel(x_ref, w1_ref, b1_ref, w2_ref, o_ref):
    # x_ref:  (B, S, N)  input in its native layout
    # w1_ref: (N, N)     conv1 weight [out, in]
    # b1_ref: (1, N)     conv1 bias
    # w2_ref: (S, S)     conv2 weight [out, in]
    # o_ref:  (S, B*N)   lane-dense output slab: o[s, b*N + n] = y[b, s, n]
    B = x_ref.shape[0]
    w1 = w1_ref[...]
    b1 = b1_ref[...]

    cols = []
    for b in range(B):  # static unroll; B is small
        xb = x_ref[b]  # (S, N)
        # conv1 over the node dim: hb[s, n] = sum_m xb[s, m] * w1[n, m]
        # (shared W1 applied per batch block; contraction on w1's dim 1 == MXU trans-B)
        hb = lax.dot_general(
            xb, w1, (((1,), (1,)), ((), ())),
            preferred_element_type=jnp.float32,
        ) + b1
        hb = hb + xb                              # residual
        cols.append(jnp.maximum(hb, 0.2 * hb))    # LeakyReLU(0.2) as one vmax

    h = jnp.concatenate(cols, axis=-1)            # (S, B*N) lane-dense slab

    # conv2 over the state dim, all batches at once: (S, S) @ (S, B*N)
    y = jnp.dot(w2_ref[...], h, preferred_element_type=jnp.float32)
    o_ref[...] = y.astype(o_ref.dtype)            # single unmasked 128-lane-wide store


def gcn_forward(x, w1, b1, w2):
    """x: (B, S, N) f32; w1: (N, N) conv1 weight [out, in]; b1: (N,); w2: (S, S)."""
    B, S, N = x.shape
    b1_2d = b1.reshape(1, N)

    flops = 2 * B * S * N * N + 2 * S * S * B * N + 4 * B * S * N
    bytes_accessed = 4 * (x.size + w1.size + b1_2d.size + w2.size + S * B * N)

    y_slab = pl.pallas_call(
        gcn_kernel,
        out_shape=jax.ShapeDtypeStruct((S, B * N), x.dtype),
        in_specs=[pl.BlockSpec(memory_space=pltpu.MemorySpace.VMEM)] * 4,
        out_specs=pl.BlockSpec(memory_space=pltpu.MemorySpace.VMEM),
        cost_estimate=pl.CostEstimate(
            flops=flops, transcendentals=0, bytes_accessed=bytes_accessed),
    )(x, w1, b1_2d, w2)

    # slab[s, b*N + n] = y[b, s, n]  ->  back to the module's (B, S, N) layout
    return jnp.transpose(y_slab.reshape(S, B, N), (1, 0, 2))


def gcn_reference(x, w1, b1, w2):
    # h[b,s,n] = sum_m W1[n,m] x[b,s,m] + b1[n]
    h = jnp.einsum("bsm,nm->bsn", x, w1) + b1[None, None, :]
    h = h + x
    h = jnp.where(h > 0, h, 0.2 * h)
    # y[b,s,n] = sum_t W2[s,t] h[b,t,n]
    return jnp.einsum("st,btn->bsn", w2, h)


if __name__ == "__main__":
    B, num_state, num_node = 2, 32, 64

    key = jax.random.PRNGKey(0)
    kx, k1, kb, k2 = jax.random.split(key, 4)

    x = jax.random.normal(kx, (B, num_state, num_node), dtype=jnp.float32)
    # conv1: Conv1d(num_node, num_node, k=1, bias=True) -> weight (num_node, num_node)
    w1 = jax.random.normal(k1, (num_node, num_node), dtype=jnp.float32) * 0.05
    b1 = jax.random.normal(kb, (num_node,), dtype=jnp.float32) * 0.05
    # conv2: Conv1d(num_state, num_state, k=1, bias=False) -> weight (num_state, num_state)
    w2 = jax.random.normal(k2, (num_state, num_state), dtype=jnp.float32) * 0.05

    out = jax.block_until_ready(gcn_forward(x, w1, b1, w2))

    ref = gcn_reference(x, w1, b1, w2)
    assert out.shape == (B, num_state, num_node)
    assert jnp.allclose(out, ref, atol=1e-4, rtol=1e-4)

    print("KERNEL_OK")
</pallas_src>

<mosaic_0001>
module attributes {stable_mosaic.version = 11 : i64} {
  func.func @gcn_kernel(%arg0: memref<2x32x64xf32, #tpu.memory_space<vmem>>, %arg1: memref<64x64xf32, #tpu.memory_space<vmem>>, %arg2: memref<1x64xf32, #tpu.memory_space<vmem>>, %arg3: memref<32x32xf32, #tpu.memory_space<vmem>>, %arg4: memref<32x128xf32, #tpu.memory_space<vmem>>) attributes {dimension_semantics = [], scalar_prefetch = 0 : i64, scratch_operands = 0 : i64, tpu.core_type = #tpu.core_type<tc>} {
    %c0 = arith.constant 0 : index
    %c0_0 = arith.constant 0 : index
    %0 = vector.load %arg1[%c0, %c0_0] : memref<64x64xf32, #tpu.memory_space<vmem>>, vector<64x64xf32>
    %c0_1 = arith.constant 0 : index
    %c0_2 = arith.constant 0 : index
    %1 = vector.load %arg2[%c0_1, %c0_2] : memref<1x64xf32, #tpu.memory_space<vmem>>, vector<1x64xf32>
    %c0_3 = arith.constant 0 : index
    %c0_4 = arith.constant 0 : index
    %c0_5 = arith.constant 0 : index
    %2 = vector.load %arg0[%c0_3, %c0_4, %c0_5] : memref<2x32x64xf32, #tpu.memory_space<vmem>>, vector<1x32x64xf32>
    %3 = vector.shape_cast %2 : vector<1x32x64xf32> to vector<32x64xf32>
    %cst = arith.constant dense<0.000000e+00> : vector<32x64xf32>
    %4 = tpu.matmul %3, %0, %cst {dimension_numbers = #tpu.dot_dimension_numbers<[1], [1], [0], [0], [0, 0, 1, 0], [], []>} : vector<32x64xf32>, vector<64x64xf32>, vector<32x64xf32> -> vector<32x64xf32>
    %5 = vector.broadcast %1 : vector<1x64xf32> to vector<32x64xf32>
    %6 = arith.addf %4, %5 : vector<32x64xf32>
    %7 = arith.addf %6, %3 : vector<32x64xf32>
    %cst_6 = arith.constant 2.000000e-01 : f32
    %8 = vector.broadcast %cst_6 : f32 to vector<32x64xf32>
    %9 = arith.mulf %8, %7 : vector<32x64xf32>
    %10 = arith.maximumf %7, %9 : vector<32x64xf32>
    %c1 = arith.constant 1 : index
    %c0_7 = arith.constant 0 : index
    %c0_8 = arith.constant 0 : index
    %11 = vector.load %arg0[%c1, %c0_7, %c0_8] : memref<2x32x64xf32, #tpu.memory_space<vmem>>, vector<1x32x64xf32>
    %12 = vector.shape_cast %11 : vector<1x32x64xf32> to vector<32x64xf32>
    %cst_9 = arith.constant dense<0.000000e+00> : vector<32x64xf32>
    %13 = tpu.matmul %12, %0, %cst_9 {dimension_numbers = #tpu.dot_dimension_numbers<[1], [1], [0], [0], [0, 0, 1, 0], [], []>} : vector<32x64xf32>, vector<64x64xf32>, vector<32x64xf32> -> vector<32x64xf32>
    %14 = vector.broadcast %1 : vector<1x64xf32> to vector<32x64xf32>
    %15 = arith.addf %13, %14 : vector<32x64xf32>
    %16 = arith.addf %15, %12 : vector<32x64xf32>
    %cst_10 = arith.constant 2.000000e-01 : f32
    %17 = vector.broadcast %cst_10 : f32 to vector<32x64xf32>
    %18 = arith.mulf %17, %16 : vector<32x64xf32>
    %19 = arith.maximumf %16, %18 : vector<32x64xf32>
    %20 = tpu.concatenate %10, %19 in 1 : vector<32x64xf32>, vector<32x64xf32> -> vector<32x128xf32>
    %c0_11 = arith.constant 0 : index
    %c0_12 = arith.constant 0 : index
    %21 = vector.load %arg3[%c0_11, %c0_12] : memref<32x32xf32, #tpu.memory_space<vmem>>, vector<32x32xf32>
    %cst_13 = arith.constant dense<0.000000e+00> : vector<32x128xf32>
    %22 = tpu.matmul %21, %20, %cst_13 {dimension_numbers = #tpu.dot_dimension_numbers<[1], [0], [0], [1], [0, 0, 1, 1], [], []>} : vector<32x32xf32>, vector<32x128xf32>, vector<32x128xf32> -> vector<32x128xf32>
    %c0_14 = arith.constant 0 : index
    %c0_15 = arith.constant 0 : index
    %23 = vector.load %arg4[%c0_14, %c0_15] : memref<32x128xf32, #tpu.memory_space<vmem>>, vector<32x128xf32>
    tpu.vector_store %arg4[%c0_14, %c0_15], %22 {strides = array<i32>} : memref<32x128xf32, #tpu.memory_space<vmem>>, vector<32x128xf32>,
    return
  }
}

</mosaic_0001>

<bundles_post_ra>
// kernel: tpu_custom_call.1
= control target key start
LH: loop header
LB: loop body
LE: loop exit
PB: predicated region body
PF: predicated region fallthrough
CT: control target
= control target key end

     0   :  { %9 = vsyncpa [#allocation3], 0  ;;  %s920_s0 = inlined_call_operand.hbm [shape: f32[2,32,64], index: 0, kind: input, shape index: {}]   ;;  %s921_s1 = inlined_call_operand.hbm [shape: f32[64,64], index: 1, kind: input, shape index: {}]   ;;  %s922_s2 = inlined_call_operand.vmem [shape: f32[1,64], index: 2, kind: input, shape index: {}]   ;;  %s923_s3 = inlined_call_operand.hbm [shape: f32[32,32], index: 3, kind: input, shape index: {}]   ;;  %s924_s4 = inlined_call_operand.hbm [shape: f32[32,128], index: 4, kind: output, shape index: {}]  }
   0x1   :  { %10 = vsyncpa [#allocation6], 0 }
   0x2   :  { %11 = vsyncpa [#allocation4], 0  ;;  %s760_s15 = smov [#allocation5]   ;;  %s761_s17 = smov [#allocation2]  }
   0x3   :  { %s29_s16 = sshll.u32 %s760_s15, 4  ;;  %s17_s18 = sshll.u32 %s761_s17, 4  ;;  %s30_s16 = int_to_ptr.vmem [resolvable:$true] %s29_s16  ;;  %s792_s18 = int_to_ptr.vmem [resolvable:$true] %s17_s18 }
   0x4   :  { %s666_s21 = scalar_lea.hbm %s921_s1, 1024 }
   0x5   :  { %p667_p0 = scmp.ne.s32.totalorder %s921_s1, %s666_s21  ;;  %p670_p1 = scmp.lt.u32.totalorder %s666_s21, %s921_s1 }
   0x7   :  { %p672_p2 = pnand %p670_p1, %p667_p0 }
   0x9   :  { %675 = shalt.err (!%p672_p2)
}
   0xa   :  { %s676_s26 = scalar_lea.vmem %s30_s16, 1024  ;;  %p681_p4 = scmp.lt.s32.totalorder %s30_s16, %s30_s16 }
   0xb   :  { %p677_p3 = scmp.ne.s32.totalorder %s30_s16, %s676_s26  ;;  %p682_p5 = scmp.lt.s32.totalorder %s676_s26, %s676_s26 }
   0xd   :  { %p683_p6 = por %p682_p5, %p681_p4 }
   0xf   :  { %p684_p7 = pnand %p683_p6, %p677_p3 }
  0x11   :  { %687 = shalt.err (!%p684_p7)
}
  0x12   :  { %s762_s27 = smov 128   ;;  %s763_s28 = smov 8  }
  0x13   :  { %35 = dma.hbm_to_vmem [thread:$0]  %s921_s1, 1024, %s30_s16, [#allocation6], %s762_s27, %s762_s27, %s763_s28  }
  0x14   :  { %s688_s7 = scalar_lea.hbm %s920_s0, 1024 }
  0x15   :  { %p689_p8 = scmp.ne.s32.totalorder %s920_s0, %s688_s7  ;;  %p692_p9 = scmp.lt.u32.totalorder %s688_s7, %s920_s0 }
  0x17   :  { %p694_p10 = pnand %p692_p9, %p689_p8 }
  0x19   :  { %697 = shalt.err (!%p694_p10)
}
  0x1a   :  { %s698_s12 = scalar_lea.vmem %s792_s18, 1024  ;;  %p703_p12 = scmp.lt.s32.totalorder %s792_s18, %s792_s18 }
  0x1b   :  { %p699_p11 = scmp.ne.s32.totalorder %s792_s18, %s698_s12  ;;  %p704_p13 = scmp.lt.s32.totalorder %s698_s12, %s698_s12 }
  0x1d   :  { %p705_p0 = por %p704_p13, %p703_p12 }
  0x1f   :  { %p706_p1 = pnand %p705_p0, %p699_p11 }
  0x21   :  { %709 = shalt.err (!%p706_p1)
}
  0x22   :  { %23 = dma.hbm_to_vmem [thread:$0]  %s920_s0, 1024, %s792_s18, [#allocation3], %s762_s27, %s762_s27, %s763_s28  }
  0x23   :  { %s764_s14 = smov [#allocation7]   ;;  %s710_s19 = scalar_lea.hbm %s923_s3, 512 }
  0x24   :  { %s43_s15 = sshll.u32 %s764_s14, 4  ;;  %p711_p2 = scmp.ne.s32.totalorder %s923_s3, %s710_s19  ;;  %s44_s15 = int_to_ptr.vmem [resolvable:$true] %s43_s15 }
  0x25   :  { %p714_p3 = scmp.lt.u32.totalorder %s710_s19, %s923_s3 }
  0x27   :  { %p716_p4 = pnand %p714_p3, %p711_p2 }
  0x29   :  { %719 = shalt.err (!%p716_p4)
}
  0x2a   :  { %s720_s24 = scalar_lea.vmem %s44_s15, 512  ;;  %p725_p6 = scmp.lt.s32.totalorder %s44_s15, %s44_s15 }
  0x2b   :  { %p721_p5 = scmp.ne.s32.totalorder %s44_s15, %s720_s24  ;;  %p726_p7 = scmp.lt.s32.totalorder %s720_s24, %s720_s24 }
  0x2d   :  { %p727_p8 = por %p726_p7, %p725_p6 }
  0x2f   :  { %p728_p9 = pnand %p727_p8, %p721_p5 }
  0x31   :  { %731 = shalt.err (!%p728_p9)
}
  0x32   :  { %49 = dma.hbm_to_vmem [thread:$0]  %s923_s3, 512, %s44_s15, [#allocation6], %s762_s27, %s762_s27, %s763_s28  }
  0x33   :  { %754 = dma.done.wait [#allocation3], 1024  }
  0x34   :  { %755 = vsyncadd [#allocation3], 4294966272 }
  0x35   :  { %756 = dma.done.wait [#allocation6], 1536  }
  0x36   :  { %757 = vsyncadd [#allocation6], 4294965760  ;;  %vm78_vm0 = vcmask 523264   ;;  %v59_v1 = vld [vmem:[#allocation5] sm:$0xff]  ;;  %v60_v2 = vld [vmem:[#allocation5 + $0x8] sm:$0xff]  ;;  %vm350_vm2 = vcmask 261120  }
  0x37   :  { %vm846_vm1 = vmpackc.low %vm78_vm0, %vm78_vm0  ;;  %v61_v3 = vld [vmem:[#allocation5 + $0x10] sm:$0xff]  ;;  %v589_v4 = vpack.c.bf16 %v60_v2, %v59_v1  ;;  %v62_v5 = vld [vmem:[#allocation5 + $0x18] sm:$0xff]  ;;  %s766_s26 = smov [#allocation8]  }
  0x38   :  { %v595_v6 = vpack.c.bf16 %v62_v5, %v61_v3  ;;  %v213_v7 = vld [vmem:[#allocation2 + $0x20] sm:$0xff]  ;;  %v64_v10 = vld [vmem:[#allocation5 + $0x28] sm:$0xff]  ;;  %v65_v12 = vld [vmem:[#allocation5 + $0x30] sm:$0xff]  ;;  %s457_s29 = sshll.u32 %s766_s26, 4  ;;  %s458_s29 = int_to_ptr.vmem [resolvable:$true] %s457_s29 }
  0x39   :  { %615 = vmatprep.subr.msk.bf16.mxu1 %vm846_vm1, %v589_v4  ;;  %569 = vmatprep.mubr.msk.f32.mxu1 %vm78_vm0, %v213_v7  ;;  %v857_v8 = vld [vmem:[#allocation2] sm:$0xff]  ;;  %v66_v13 = vld [vmem:[#allocation5 + $0x38] sm:$0xff]  ;;  %v214_v15 = vld [vmem:[#allocation2 + $0x28] sm:$0xff]  ;;  %s732_s30 = scalar_lea.vmem %s458_s29, 512  ;;  %p737_p11 = scmp.lt.s32.totalorder %s458_s29, %s458_s29 }
  0x3a   :  { %618 = vmatpush3.bf16.xpose.msk.msra.mxu1 %vm846_vm1, %v589_v4  ;;  %591 = vmatprep.subr.msk.bf16.mxu0 %vm846_vm1, %v589_v4  ;;  %v63_v9 = vld [vmem:[#allocation5 + $0x20] sm:$0xff]  ;;  %v607_v14 = vpack.c.bf16 %v66_v13, %v65_v12  ;;  %v215_v16 = vld [vmem:[#allocation2 + $0x30] sm:$0xff]  ;;  %v69_v17 = vld [vmem:[#allocation2 + $0x8] sm:$0xff]  ;;  %p733_p10 = scmp.ne.s32.totalorder %s458_s29, %s732_s30  ;;  %p738_p12 = scmp.lt.s32.totalorder %s732_s30, %s732_s30 }
  0x3b   :  { %621 = vmatprep.subr.msk.bf16.mxu1 %vm846_vm1, %v595_v6  ;;  %594 = vmatpush3.bf16.xpose.msk.msra.mxu0 %vm846_vm1, %v589_v4  ;;  %v601_v11 = vpack.c.bf16 %v64_v10, %v63_v9  ;;  %v70_v18 = vld [vmem:[#allocation2 + $0x10] sm:$0xff]  ;;  %v216_v19 = vld [vmem:[#allocation2 + $0x38] sm:$0xff]  ;;  %v470_v21 = vld [vmem:[%s922_s2] ss:$0 sm:$0xff]  ;;  %s765_s2 = smov 64  }
  0x3c   :  { %597 = vmatprep.subr.msk.bf16.mxu0 %vm846_vm1, %v595_v6  ;;  %547 = vmatprep.mubr.msk.f32.mxu0 %vm78_vm0, %v857_v8  ;;  %v71_v20 = vld [vmem:[#allocation2 + $0x18] sm:$0xff]  ;;  %v346_v47 = vld [vmem:[#allocation7] sm:$0xff]  ;;  %v348_v48 = vld [vmem:[#allocation7 + $0x10] sm:$0xff]  ;;  %p739_p13 = por %p738_p12, %p737_p11 }
  0x3e   :  { %p740_p0 = pnand %p739_p13, %p733_p10 }
  0x42   :  { %624 = vmatpush3.bf16.xpose.msk.msra.mxu1 %vm846_vm1, %v595_v6 }
  0x43   :  { %627 = vmatprep.subr.msk.bf16.mxu1 %vm846_vm1, %v601_v11  ;;  %600 = vmatpush3.bf16.xpose.msk.msra.mxu0 %vm846_vm1, %v595_v6 }
  0x44   :  { %603 = vmatprep.subr.msk.bf16.mxu0 %vm846_vm1, %v601_v11 }
  0x4a   :  { %630 = vmatpush3.bf16.xpose.msk.msra.mxu1 %vm846_vm1, %v601_v11 }
  0x4b   :  { %633 = vmatprep.subr.msk.bf16.mxu1 %vm846_vm1, %v607_v14  ;;  %606 = vmatpush3.bf16.xpose.msk.msra.mxu0 %vm846_vm1, %v601_v11 }
  0x4c   :  { %609 = vmatprep.subr.msk.bf16.mxu0 %vm846_vm1, %v607_v14 }
  0x52   :  { %636 = vmatpush3.bf16.xpose.msk.msra.mxu1 %vm846_vm1, %v607_v14 }
  0x53   :  { %612 = vmatpush3.bf16.xpose.msk.msra.mxu0 %vm846_vm1, %v607_v14  ;;  %v347_v14 = vld [vmem:[#allocation7 + $0x8] sm:$0xff] }
  0x59   :  { %570 = vmatmul.mubr.msk.f32.vlgmr.msra.gmra.mrb[0].mxu1 %vm78_vm0, %v214_v15 }
  0x5a   :  { %572 = vmatprep.mubr.msk.f32.mxu1 %vm78_vm0, %v215_v16  ;;  %548 = vmatmul.mubr.msk.f32.vlgmr.msra.gmra.mrb[0].mxu0 %vm78_vm0, %v69_v17 }
  0x5b   :  { %550 = vmatprep.mubr.msk.f32.mxu0 %vm78_vm0, %v70_v18 }
  0x5d   :  { %573 = vmatmul.mubr.msk.f32.gmra.mrb[2].mxu1 %vm78_vm0, %v216_v19 }
  0x5e   :  { %551 = vmatmul.mubr.msk.f32.gmra.mrb[2].mxu0 %vm78_vm0, %v71_v20  ;;  %586 = vmatprep.mubr.msk.f32.mxu1 %vm350_vm2, %v348_v48 }
  0x5f   :  { %583 = vmatprep.mubr.msk.f32.mxu0 %vm350_vm2, %v346_v47 }
 0x12c   :  { %v571_v22 = vpop.f32.mrb[0].mxu1 }
 0x12d   :  { %v301_v23 = vadd.f32 %v571_v22, %v470_v21  ;;  %v295_v24 = vpop.f32.mrb[1].mxu1  ;;  %v549_v25 = vpop.f32.mrb[0].mxu0 }
 0x12e   :  { %v296_v26 = vadd.f32 %v470_v21, %v295_v24  ;;  %v187_v27 = vadd.f32 %v549_v25, %v470_v21  ;;  %v181_v28 = vpop.f32.mrb[1].mxu0 }
 0x12f   :  { %v315_v29 = vadd.f32 %v301_v23, %v214_v15  ;;  %v182_v30 = vadd.f32 %v470_v21, %v181_v28  ;;  %v349_v15 = vld [vmem:[#allocation7 + $0x18] sm:$0xff] }
 0x130   :  { %v314_v31 = vadd.f32 %v296_v26, %v213_v7  ;;  %v574_v32 = vpop.f32.mrb[2].mxu1  ;;  %v201_v54 = vadd.f32 %v187_v27, %v69_v17 }
 0x131   :  { %v319_v33 = vmul.f32 0.2, %v315_v29  ;;  %v311_v34 = vadd.f32 %v574_v32, %v470_v21  ;;  %v305_v35 = vpop.f32.mrb[3].mxu1  ;;  %v552_v36 = vpop.f32.mrb[2].mxu0  ;;  %v200_v55 = vadd.f32 %v182_v30, %v857_v8 }
 0x132   :  { %v318_v37 = vmul.f32 0.2, %v314_v31  ;;  %v306_v38 = vadd.f32 %v470_v21, %v305_v35  ;;  %v197_v39 = vadd.f32 %v552_v36, %v470_v21  ;;  %v191_v40 = vpop.f32.mrb[3].mxu0  ;;  %v205_v56 = vmul.f32 0.2, %v201_v54 }
 0x133   :  { %v317_v41 = vadd.f32 %v311_v34, %v216_v19  ;;  %v323_v42 = vmax.f32 %v315_v29, %v319_v33  ;;  %v192_v43 = vadd.f32 %v470_v21, %v191_v40  ;;  %v204_v57 = vmul.f32 0.2, %v200_v55 }
 0x134   :  { %v316_v44 = vadd.f32 %v306_v38, %v215_v16  ;;  %v322_v45 = vmax.f32 %v314_v31, %v318_v37  ;;  %v203_v58 = vadd.f32 %v197_v39, %v71_v20  ;;  %v209_v60 = vmax.f32 %v201_v54, %v205_v56 }
 0x135   :  { %v321_v46 = vmul.f32 0.2, %v317_v41  ;;  %v202_v59 = vadd.f32 %v192_v43, %v70_v18  ;;  %v208_v61 = vmax.f32 %v200_v55, %v204_v57 }
 0x136   :  { %v320_v49 = vmul.f32 0.2, %v316_v44  ;;  %v656_v50 = vpack.i.bf16 %v323_v42, %v322_v45  ;;  %v207_v63 = vmul.f32 0.2, %v203_v58 }
 0x137   :  { %v325_v51 = vmax.f32 %v317_v41, %v321_v46  ;;  %v206_v0 = vmul.f32 0.2, %v202_v59 }
 0x138   :  { %v324_v52 = vmax.f32 %v316_v44, %v320_v49  ;;  %657 = vrot.lane.b32.xlu0 %v656_v50, %s765_s2  ;;  %v211_v7 = vmax.f32 %v203_v58, %v207_v63 }
 0x139   :  { %v210_v9 = vmax.f32 %v202_v59, %v206_v0 }
 0x13a   :  { %v661_v53 = vpack.i.bf16 %v325_v51, %v324_v52 }
 0x13c   :  { %662 = vrot.lane.b32.xlu0 %v661_v53, %s765_s2 }
 0x1aa   :  { %v658_v62 = vpop.permute.xlu0 %657 }
 0x1ab   :  { %v660_v1 = vunpack.i.h.bf16 %v658_v62  ;;  %v659_v2 = vunpack.i.l.bf16 %v658_v62 }
 0x1ad   :  { %v342_v3 = vsel %vm78_vm0, %v208_v61, %v659_v2  ;;  %v343_v4 = vsel %vm78_vm0, %v209_v60, %v660_v1 }
 0x1ae   :  { %v637_v5 = vpack.c.bf16 %v343_v4, %v342_v3  ;;  %v663_v6 = vpop.permute.xlu0 %662 }
 0x1af   :  { %v665_v8 = vunpack.i.h.bf16 %v663_v6  ;;  %v664_v10 = vunpack.i.l.bf16 %v663_v6 }
 0x1b0   :  { %638 = vmatprep.subr.bf16.mxu0 %v637_v5  ;;  %645 = vmatprep.subr.bf16.mxu1 %v637_v5 }
 0x1b1   :  { %v344_v11 = vsel %vm78_vm0, %v210_v9, %v664_v10  ;;  %v345_v12 = vsel %vm78_vm0, %v211_v7, %v665_v8  ;;  %640 = vmatpush3.bf16.msra.mxu0 %v637_v5  ;;  %647 = vmatpush3.bf16.msra.mxu1 %v637_v5 }
 0x1b2   :  { %v641_v13 = vpack.c.bf16 %v345_v12, %v344_v11 }
 0x1b4   :  { %642 = vmatprep.subr.bf16.mxu0 %v641_v13  ;;  %646 = vmatprep.subr.bf16.mxu1 %v641_v13 }
 0x1b5   :  { %644 = vmatpush3.bf16.msra.mxu0 %v641_v13  ;;  %648 = vmatpush3.bf16.msra.mxu1 %v641_v13 }
 0x1b8   :  { %584 = vmatmul.mubr.msk.f32.vlgmr.msra.gmra.mrb[4].mxu0 %vm350_vm2, %v347_v14  ;;  %587 = vmatmul.mubr.msk.f32.vlgmr.msra.gmra.mrb[4].mxu1 %vm350_vm2, %v349_v15 }
 0x28b   :  { %v585_v16 = vpop.f32.mrb[4].mxu0  ;;  %v588_v17 = vpop.f32.mrb[4].mxu1 }
 0x28c   :  { %449 = vst [vmem:[#allocation8 + $0x8] sm:$0xff] %v585_v16  ;;  %451 = vst [vmem:[#allocation8 + $0x18] sm:$0xff] %v588_v17  ;;  %v429_v18 = vpop.f32.mrb[5].mxu0  ;;  %v439_v19 = vpop.f32.mrb[5].mxu1 }
 0x28d   :  { %448 = vst [vmem:[#allocation8] sm:$0xff] %v429_v18  ;;  %450 = vst [vmem:[#allocation8 + $0x10] sm:$0xff] %v439_v19 }
 0x28e   :  { %743 = shalt.err (!%p740_p0)
}
 0x28f   :  { %s744_s7 = scalar_lea.hbm %s924_s4, 512 }
 0x290   :  { %p745_p1 = scmp.ne.s32.totalorder %s924_s4, %s744_s7  ;;  %p748_p2 = scmp.lt.u32.totalorder %s744_s7, %s924_s4 }
 0x292   :  { %p750_p3 = pnand %p748_p2, %p745_p1 }
 0x294   :  { %753 = shalt.err (!%p750_p3)
}
 0x295   :  { %463 = dma.vmem_to_hbm [thread:$0]  %s458_s29, 512, %s924_s4, [#allocation4], %s762_s27, %s762_s27, %s763_s28  }
 0x296   :  { %758 = dma.done.wait [#allocation4], 512  }
 0x297   :  { %759 = vsyncadd [#allocation4], 4294966784 }
 0x298   :  { %467 = vsyncpa [#allocation3], 1 }
 0x299   :  { %468 = vsyncpa [#allocation6], 1 }
 0x29a   :  { %469 = vsyncpa [#allocation4], 1 }

</bundles_post_ra>
